<compile_context>
chip_gen: v7x
topology: tpu7x:2x2x1
jax: 0.10.0
libtpu: 0.0.40
codegen_flags: <defaults>
</compile_context>

<pallas_src>
import jax
import jax.numpy as jnp
from jax.experimental import pallas as pl
from jax.experimental.pallas import tpu as pltpu


_NEG_INF = -1e30  # bias for padded action lanes -> softmax(padded) ~ 0


# ----------------------------- small helpers ------------------------------- #

def _round_up(x, m):
    return ((x + m - 1) // m) * m


def _cdiv(a, b):
    return (a + b - 1) // b


def _device_kind():
    try:
        return jax.devices()[0].device_kind.lower()
    except Exception:
        return ""


def _default_compute_dtype():
    """bf16 wherever the MXU consumes it natively (v4/v5/v6/v7; f32 accumulate).
    All elementwise math (bias/tanh/softmax/softplus) in the kernel is f32, so
    the lack of a bf16 VPU/EUP on older parts does not matter. Only v2/v3 fall
    back to f32."""
    kind = _device_kind()
    if "v2" in kind or "v3" in kind:
        return jnp.float32
    return jnp.bfloat16


def _vmem_capacity_bytes():
    try:
        return int(pltpu.get_tpu_info().vmem_capacity_bytes)
    except Exception:
        pass
    kind = _device_kind()
    if "v7" in kind:
        return 64 << 20
    if "v2" in kind or "v3" in kind:
        return 16 << 20
    if any(v in kind for v in ("v4", "v5", "v6")):
        return 128 << 20
    return 64 << 20  # unknown: be conservative


def _num_tensorcores():
    kind = _device_kind()
    return 2 if ("v7" in kind or "v4" in kind) else 1


# ----------------------------- kernels ------------------------------------- #

def _mlp_logits(obs_ref, w1_ref, b1_ref, w2_ref, b2_ref, w3_ref, b3_ref):
    """Shared 3-layer MLP body. MXU matmuls accumulate in f32; bias/tanh in f32."""
    x = jnp.dot(obs_ref[...], w1_ref[...], preferred_element_type=jnp.float32)
    x = jnp.tanh(x + b1_ref[...])
    x = jnp.dot(x.astype(w2_ref.dtype), w2_ref[...],
                preferred_element_type=jnp.float32)
    x = jnp.tanh(x + b2_ref[...])
    logits = jnp.dot(x.astype(w3_ref.dtype), w3_ref[...],
                     preferred_element_type=jnp.float32)
    return logits + b3_ref[...]


def _actor_discrete_kernel(obs_ref, w1_ref, b1_ref, w2_ref, b2_ref,
                           w3_ref, b3_ref, out_ref):
    logits = _mlp_logits(obs_ref, w1_ref, b1_ref, w2_ref, b2_ref, w3_ref, b3_ref)
    # Numerically-stable softmax over the (padded, lane-dense) action dim.
    m = jnp.max(logits, axis=-1, keepdims=True)
    e = jnp.exp(logits - m)
    denom = jnp.sum(e, axis=-1, keepdims=True)
    # EUP approximate reciprocal + one Newton step on the [tile_b, 1] column
    # (keeps the divide off the VALU slot, restores ~f32 precision for ~free).
    inv = pl.reciprocal(denom, approx=True)
    inv = inv * (2.0 - denom * inv)
    out_ref[...] = (e * inv).astype(out_ref.dtype)


def _actor_continuous_kernel(obs_ref, w1_ref, b1_ref, w2_ref, b2_ref,
                             w3_ref, b3_ref, mu_ref, sigma_ref):
    logits = _mlp_logits(obs_ref, w1_ref, b1_ref, w2_ref, b2_ref, w3_ref, b3_ref)
    mu_ref[...] = jnp.tanh(logits).astype(mu_ref.dtype)
    # Stable softplus: max(x, 0) + log1p(exp(-|x|))
    sp = jnp.maximum(logits, 0.0) + jnp.log1p(jnp.exp(-jnp.abs(logits)))
    sigma_ref[...] = sp.astype(sigma_ref.dtype)


# ----------------------------- param preparation ---------------------------- #

def prepare_params(params, *, is_continuous=False, compute_dtype=None):
    """ONE-TIME weight preparation (call once, reuse across forward calls).

    Pads hidden/action dims to multiples of 128 (lane-dense MXU/N dims, unmasked
    vst stores), casts weights to the MXU compute dtype, keeps biases f32, and
    applies a -1e30 bias to padded action lanes for the discrete (softmax) head
    so they contribute ~0 probability."""
    if compute_dtype is None:
        compute_dtype = _default_compute_dtype()
    compute_dtype = jnp.dtype(compute_dtype)

    w1, b1 = params["w1"], params["b1"]   # [dim_obs, H], [1, H]
    w2, b2 = params["w2"], params["b2"]   # [H, H],       [1, H]
    w3, b3 = params["w3"], params["b3"]   # [H, A],       [1, A]
    dim_obs, hidden = w1.shape
    dim_action = w3.shape[1]
    Hp = _round_up(hidden, 128)
    Ap = _round_up(dim_action, 128)

    def pad2(a, rows, cols, fill=0.0):
        return jnp.pad(a, ((0, rows - a.shape[0]), (0, cols - a.shape[1])),
                       constant_values=fill)

    return {
        "w1": pad2(w1, dim_obs, Hp).astype(compute_dtype),
        "w2": pad2(w2, Hp, Hp).astype(compute_dtype),
        "w3": pad2(w3, Hp, Ap).astype(compute_dtype),
        "b1": pad2(b1, 1, Hp).astype(jnp.float32),
        "b2": pad2(b2, 1, Hp).astype(jnp.float32),
        "b3": pad2(b3, 1, Ap,
                   fill=(0.0 if is_continuous else _NEG_INF)).astype(jnp.float32),
        "dim_obs": int(dim_obs),
        "hidden": int(hidden),
        "dim_action": int(dim_action),
        "Hp": int(Hp),
        "Ap": int(Ap),
        "compute_dtype": compute_dtype,
        "is_continuous": bool(is_continuous),
    }


# ----------------------------- forward wrapper ------------------------------ #

def actor_forward(obs, params, *, is_continuous=False, tile_b=None,
                  compute_dtype=None, out_dtype=jnp.float32):
    """obs: [B, dim_obs] float32.

    `params` may be either raw nn.Linear-style params ({w1,b1,...}, weights
    [in,out], biases [1,out]) — prepared on the fly (slower per call) — or the
    output of prepare_params() (preferred: zero per-call weight prep traffic).
    If prepared params are given, their embedded is_continuous / compute_dtype
    take precedence."""
    if "Hp" not in params:
        params = prepare_params(params, is_continuous=is_continuous,
                                compute_dtype=compute_dtype)
    is_continuous = params["is_continuous"]
    compute_dtype = params["compute_dtype"]

    B, dim_obs = obs.shape
    assert dim_obs == params["dim_obs"], "obs feature dim mismatch"
    Hp, Ap = params["Hp"], params["Ap"]
    dim_action = params["dim_action"]
    w1p, b1p = params["w1"], params["b1"]
    w2p, b2p = params["w2"], params["b2"]
    w3p, b3p = params["w3"], params["b3"]

    itm = jnp.dtype(compute_dtype).itemsize
    out_itm = jnp.dtype(out_dtype).itemsize
    n_out = 2 if is_continuous else 1

    kind = _device_kind()
    vmem_cap = _vmem_capacity_bytes()
    budget = max(12 << 20, int(vmem_cap * 0.75))   # ~96 MiB on v5e/v6e, ~48 on v7x
    n_tc = _num_tensorcores()

    # ---- batch tiling: pick a step count, then balanced multiple-of-8 tiles ----
    if tile_b is None:
        max_tile = 512
        n_steps = max(1, _cdiv(B, max_tile))
        # 2-TensorCore chips: "parallel" batch axis only helps if grid >= 2 steps
        # (ideally a multiple of the core count).
        if n_tc >= 2 and B >= 256 * n_tc and n_steps % n_tc != 0:
            n_steps = _round_up(n_steps, n_tc)
        tile_b = _round_up(_cdiv(B, n_steps), 8)
        # MXU-friendly M tile (256 on the 256x256 MXUs of v6e/v7x, else 128),
        # but only if the alignment bump costs little extra padding.
        mxu_aligns = (256, 128) if ("v6" in kind or "v7" in kind) else (128,)
        for a in mxu_aligns:
            t = _round_up(tile_b, a)
            if tile_b >= a // 2 and t * n_steps - B <= max(a // 2, B // 8):
                tile_b = t
                break
    else:
        tile_b = max(8, _round_up(int(tile_b), 8))

    def vmem_est(tb):
        # weights/biases single-buffered (constant index_map + Buffered(1));
        # obs/outputs double-buffered; plus f32 intermediates.
        w_bytes = (dim_obs * Hp + Hp * Hp + Hp * Ap) * itm + (2 * Hp + Ap) * 4
        io_bytes = 2 * tb * dim_obs * itm + 2 * n_out * tb * Ap * out_itm
        act_bytes = 4 * tb * Hp * 4 + 2 * tb * Ap * 4
        return w_bytes + io_bytes + act_bytes

    while tile_b > 8 and vmem_est(tile_b) > budget:
        tile_b = max(8, _round_up(tile_b // 2, 8))

    n_steps = _cdiv(B, tile_b)
    Bp = n_steps * tile_b
    obs_p = obs if Bp == B else jnp.pad(obs, ((0, Bp - B), (0, 0)))
    obs_p = obs_p.astype(compute_dtype)

    grid = (n_steps,)
    # dim_obs stays unpadded (tiny K under-feeds the MXU either way; padding it
    # would only multiply obs HBM traffic).
    obs_spec = pl.BlockSpec((tile_b, dim_obs), lambda i: (i, 0))
    out_spec = pl.BlockSpec((tile_b, Ap), lambda i: (i, 0))   # lane-dense stores

    flops = 2 * Bp * (dim_obs * Hp + Hp * Hp + Hp * Ap)
    transcendentals = Bp * (2 * Hp + (2 * Ap if is_continuous else Ap))
    bytes_accessed = (Bp * dim_obs * itm
                      + (dim_obs * Hp + Hp * Hp + Hp * Ap) * itm
                      + (2 * Hp + Ap) * 4
                      + n_out * Bp * Ap * out_itm)
    cost = pl.CostEstimate(flops=int(flops),
                           transcendentals=int(transcendentals),
                           bytes_accessed=int(bytes_accessed))

    compiler_params = pltpu.CompilerParams(
        dimension_semantics=("parallel",),   # shards batch steps across 2 TCs
        vmem_limit_bytes=int(min(max(2 * vmem_est(tile_b), 16 << 20),
                                 int(vmem_cap * 0.9))),
    )

    if is_continuous:
        kernel = _actor_continuous_kernel
        out_shape = (jax.ShapeDtypeStruct((Bp, Ap), out_dtype),
                     jax.ShapeDtypeStruct((Bp, Ap), out_dtype))
        out_specs = [out_spec, out_spec]
    else:
        kernel = _actor_discrete_kernel
        out_shape = jax.ShapeDtypeStruct((Bp, Ap), out_dtype)
        out_specs = out_spec

    def run(weight_mode):
        def wspec(arr):
            if weight_mode is None:
                return pl.BlockSpec(arr.shape, lambda i: (0, 0))
            return pl.BlockSpec(arr.shape, lambda i: (0, 0),
                                pipeline_mode=weight_mode)
        grid_spec = pltpu.PrefetchScalarGridSpec(
            num_scalar_prefetch=0,
            grid=grid,
            in_specs=[obs_spec,
                      wspec(w1p), wspec(b1p),
                      wspec(w2p), wspec(b2p),
                      wspec(w3p), wspec(b3p)],
            out_specs=out_specs,
        )
        return pl.pallas_call(
            kernel,
            out_shape=out_shape,
            grid_spec=grid_spec,
            compiler_params=compiler_params,
            cost_estimate=cost,
        )(obs_p, w1p, b1p, w2p, b2p, w3p, b3p)

    try:
        # Grid-invariant weights/biases: single buffer (halves their VMEM
        # footprint, no redundant per-step weight DMAs).
        result = run(pl.Buffered(1))
    except Exception:
        # Fallback for jax versions that reject pipeline_mode / Buffered(1):
        # default double buffering (still correct, slightly more VMEM).
        result = run(None)

    if is_continuous:
        mu_p, sigma_p = result
        return mu_p[:B, :dim_action], sigma_p[:B, :dim_action]
    return result[:B, :dim_action]


# ----------------------------- init / reference ----------------------------- #

def init_params(key, dim_obs, dim_action, hidden_size):
    """nn.Linear-style U(-1/sqrt(fan_in), 1/sqrt(fan_in)) init.
    Weights stored pre-transposed as [in, out]; biases as [1, out]; all f32."""
    ks = jax.random.split(key, 6)

    def lin(kw, kb, fan_in, fan_out):
        bound = 1.0 / jnp.sqrt(fan_in)
        w = jax.random.uniform(kw, (fan_in, fan_out), jnp.float32, -bound, bound)
        b = jax.random.uniform(kb, (1, fan_out), jnp.float32, -bound, bound)
        return w, b

    w1, b1 = lin(ks[0], ks[1], dim_obs, hidden_size)
    w2, b2 = lin(ks[2], ks[3], hidden_size, hidden_size)
    w3, b3 = lin(ks[4], ks[5], hidden_size, dim_action)
    return {"w1": w1, "b1": b1, "w2": w2, "b2": b2, "w3": w3, "b3": b3}


def actor_reference(obs, params):
    x = jnp.tanh(obs @ params["w1"] + params["b1"])
    x = jnp.tanh(x @ params["w2"] + params["b2"])
    logits = x @ params["w3"] + params["b3"]
    return jax.nn.softmax(logits, axis=1)


def actor_reference_continuous(obs, params):
    x = jnp.tanh(obs @ params["w1"] + params["b1"])
    x = jnp.tanh(x @ params["w2"] + params["b2"])
    logits = x @ params["w3"] + params["b3"]
    return jnp.tanh(logits), jax.nn.softplus(logits)


if __name__ == "__main__":
    B, dim_obs, hidden, dim_action = 32, 16, 32, 4

    key = jax.random.PRNGKey(0)
    k_obs, k_par = jax.random.split(key)
    obs = jax.random.normal(k_obs, (B, dim_obs), jnp.float32)
    params = init_params(k_par, dim_obs, dim_action, hidden)

    cdt = _default_compute_dtype()
    atol = 5e-4 if cdt == jnp.dtype(jnp.float32) else 3e-2

    # One-time weight prep (padding + cast) hoisted out of the forward path.
    prep_disc = prepare_params(params, is_continuous=False)
    prep_cont = prepare_params(params, is_continuous=True)
    jax.block_until_ready((prep_disc["w2"], prep_cont["w3"]))

    # Discrete (default) branch: softmax over actions.
    probs = actor_forward(obs, prep_disc)
    probs = jax.block_until_ready(probs)
    ref = actor_reference(obs, params)
    assert probs.shape == (B, dim_action)
    assert jnp.allclose(probs, ref, atol=atol, rtol=atol)
    assert jnp.allclose(jnp.sum(probs, axis=1), 1.0, atol=max(atol, 1e-3))

    # Continuous branch: (tanh mu, softplus sigma).
    mu, sigma = actor_forward(obs, prep_cont)
    jax.block_until_ready((mu, sigma))
    mu_ref, sigma_ref = actor_reference_continuous(obs, params)
    assert mu.shape == (B, dim_action) and sigma.shape == (B, dim_action)
    assert jnp.allclose(mu, mu_ref, atol=atol, rtol=atol)
    assert jnp.allclose(sigma, sigma_ref, atol=atol, rtol=atol)

    # Raw-params path (prep done internally) still works.
    probs_raw = jax.block_until_ready(actor_forward(obs, params))
    assert jnp.allclose(probs_raw, ref, atol=atol, rtol=atol)

    print("KERNEL_OK")
</pallas_src>

<mosaic_0001>
module attributes {stable_mosaic.version = 11 : i64} {
  func.func @_actor_discrete_kernel(%arg0: i32, %arg1: memref<32x16xbf16, #tpu.memory_space<vmem>>, %arg2: memref<16x128xbf16, #tpu.memory_space<vmem>>, %arg3: memref<1x128xf32, #tpu.memory_space<vmem>>, %arg4: memref<128x128xbf16, #tpu.memory_space<vmem>>, %arg5: memref<1x128xf32, #tpu.memory_space<vmem>>, %arg6: memref<128x128xbf16, #tpu.memory_space<vmem>>, %arg7: memref<1x128xf32, #tpu.memory_space<vmem>>, %arg8: memref<32x128xf32, #tpu.memory_space<vmem>>) attributes {dimension_semantics = [#tpu.dimension_semantics<parallel>], iteration_bounds = array<i64: 1>, scalar_prefetch = 0 : i64, scratch_operands = 0 : i64, tpu.core_type = #tpu.core_type<tc>, window_params = [{transform_indices = @transform_0, window_bounds = array<i64: 32, 16>}, {pipeline_mode = #tpu.pipeline_mode<synchronous>, transform_indices = @transform_1, window_bounds = array<i64: 16, 128>}, {pipeline_mode = #tpu.pipeline_mode<synchronous>, transform_indices = @transform_2, window_bounds = array<i64: 1, 128>}, {pipeline_mode = #tpu.pipeline_mode<synchronous>, transform_indices = @transform_3, window_bounds = array<i64: 128, 128>}, {pipeline_mode = #tpu.pipeline_mode<synchronous>, transform_indices = @transform_4, window_bounds = array<i64: 1, 128>}, {pipeline_mode = #tpu.pipeline_mode<synchronous>, transform_indices = @transform_5, window_bounds = array<i64: 128, 128>}, {pipeline_mode = #tpu.pipeline_mode<synchronous>, transform_indices = @transform_6, window_bounds = array<i64: 1, 128>}, {transform_indices = @transform_7, window_bounds = array<i64: 32, 128>}]} {
    %c0 = arith.constant 0 : index
    %c0_0 = arith.constant 0 : index
    %0 = vector.load %arg1[%c0, %c0_0] : memref<32x16xbf16, #tpu.memory_space<vmem>>, vector<32x16xbf16>
    %c0_1 = arith.constant 0 : index
    %c0_2 = arith.constant 0 : index
    %1 = vector.load %arg2[%c0_1, %c0_2] : memref<16x128xbf16, #tpu.memory_space<vmem>>, vector<16x128xbf16>
    %cst = arith.constant dense<0.000000e+00> : vector<32x128xf32>
    %2 = tpu.matmul %0, %1, %cst {dimension_numbers = #tpu.dot_dimension_numbers<[1], [0], [0], [1], [0, 0, 1, 1], [], []>} : vector<32x16xbf16>, vector<16x128xbf16>, vector<32x128xf32> -> vector<32x128xf32>
    %c0_3 = arith.constant 0 : index
    %c0_4 = arith.constant 0 : index
    %3 = vector.load %arg3[%c0_3, %c0_4] : memref<1x128xf32, #tpu.memory_space<vmem>>, vector<1x128xf32>
    %4 = vector.broadcast %3 : vector<1x128xf32> to vector<32x128xf32>
    %5 = arith.addf %2, %4 : vector<32x128xf32>
    %6 = math.tanh %5 : vector<32x128xf32>
    %7 = arith.truncf %6 : vector<32x128xf32> to vector<32x128xbf16>
    %c0_5 = arith.constant 0 : index
    %c0_6 = arith.constant 0 : index
    %8 = vector.load %arg4[%c0_5, %c0_6] : memref<128x128xbf16, #tpu.memory_space<vmem>>, vector<128x128xbf16>
    %cst_7 = arith.constant dense<0.000000e+00> : vector<32x128xf32>
    %9 = tpu.matmul %7, %8, %cst_7 {dimension_numbers = #tpu.dot_dimension_numbers<[1], [0], [0], [1], [0, 0, 1, 1], [], []>} : vector<32x128xbf16>, vector<128x128xbf16>, vector<32x128xf32> -> vector<32x128xf32>
    %c0_8 = arith.constant 0 : index
    %c0_9 = arith.constant 0 : index
    %10 = vector.load %arg5[%c0_8, %c0_9] : memref<1x128xf32, #tpu.memory_space<vmem>>, vector<1x128xf32>
    %11 = vector.broadcast %10 : vector<1x128xf32> to vector<32x128xf32>
    %12 = arith.addf %9, %11 : vector<32x128xf32>
    %13 = math.tanh %12 : vector<32x128xf32>
    %14 = arith.truncf %13 : vector<32x128xf32> to vector<32x128xbf16>
    %c0_10 = arith.constant 0 : index
    %c0_11 = arith.constant 0 : index
    %15 = vector.load %arg6[%c0_10, %c0_11] : memref<128x128xbf16, #tpu.memory_space<vmem>>, vector<128x128xbf16>
    %cst_12 = arith.constant dense<0.000000e+00> : vector<32x128xf32>
    %16 = tpu.matmul %14, %15, %cst_12 {dimension_numbers = #tpu.dot_dimension_numbers<[1], [0], [0], [1], [0, 0, 1, 1], [], []>} : vector<32x128xbf16>, vector<128x128xbf16>, vector<32x128xf32> -> vector<32x128xf32>
    %c0_13 = arith.constant 0 : index
    %c0_14 = arith.constant 0 : index
    %17 = vector.load %arg7[%c0_13, %c0_14] : memref<1x128xf32, #tpu.memory_space<vmem>>, vector<1x128xf32>
    %18 = vector.broadcast %17 : vector<1x128xf32> to vector<32x128xf32>
    %19 = arith.addf %16, %18 : vector<32x128xf32>
    %cst_15 = arith.constant dense<0xFF800000> : vector<32xf32>
    %20 = vector.multi_reduction <maximumf>, %19, %cst_15 [1] : vector<32x128xf32> to vector<32xf32>
    %21 = vector.shape_cast %20 : vector<32xf32> to vector<32x1xf32>
    %22 = vector.broadcast %21 : vector<32x1xf32> to vector<32x128xf32>
    %23 = arith.subf %19, %22 : vector<32x128xf32>
    %24 = math.exp %23 : vector<32x128xf32>
    %cst_16 = arith.constant dense<0.000000e+00> : vector<32xf32>
    %25 = vector.multi_reduction <add>, %24, %cst_16 [1] : vector<32x128xf32> to vector<32xf32>
    %26 = vector.shape_cast %25 : vector<32xf32> to vector<32x1xf32>
    %27 = tpu.reciprocal %26 {approx = true} : vector<32x1xf32> -> vector<32x1xf32>
    %28 = arith.mulf %26, %27 : vector<32x1xf32>
    %cst_17 = arith.constant 2.000000e+00 : f32
    %29 = vector.broadcast %cst_17 : f32 to vector<32x1xf32>
    %30 = arith.subf %29, %28 : vector<32x1xf32>
    %31 = arith.mulf %27, %30 : vector<32x1xf32>
    %32 = vector.broadcast %31 : vector<32x1xf32> to vector<32x128xf32>
    %33 = arith.mulf %24, %32 : vector<32x128xf32>
    %c0_18 = arith.constant 0 : index
    %c0_19 = arith.constant 0 : index
    %34 = vector.load %arg8[%c0_18, %c0_19] : memref<32x128xf32, #tpu.memory_space<vmem>>, vector<32x128xf32>
    tpu.vector_store %arg8[%c0_18, %c0_19], %33 {strides = array<i32>} : memref<32x128xf32, #tpu.memory_space<vmem>>, vector<32x128xf32>,
    return
  }
  func.func @transform_0(%arg0: i32) -> (i32, i32) {
    %c0_i32 = arith.constant 0 : i32
    %c0_i32_0 = arith.constant 0 : i32
    return %arg0, %c0_i32 : i32, i32
  }
  func.func @transform_1(%arg0: i32) -> (i32, i32) {
    %c0_i32 = arith.constant 0 : i32
    %c0_i32_0 = arith.constant 0 : i32
    %c0_i32_1 = arith.constant 0 : i32
    return %c0_i32, %c0_i32_0 : i32, i32
  }
  func.func @transform_2(%arg0: i32) -> (i32, i32) {
    %c0_i32 = arith.constant 0 : i32
    %c0_i32_0 = arith.constant 0 : i32
    %c0_i32_1 = arith.constant 0 : i32
    return %c0_i32, %c0_i32_0 : i32, i32
  }
  func.func @transform_3(%arg0: i32) -> (i32, i32) {
    %c0_i32 = arith.constant 0 : i32
    %c0_i32_0 = arith.constant 0 : i32
    %c0_i32_1 = arith.constant 0 : i32
    return %c0_i32, %c0_i32_0 : i32, i32
  }
  func.func @transform_4(%arg0: i32) -> (i32, i32) {
    %c0_i32 = arith.constant 0 : i32
    %c0_i32_0 = arith.constant 0 : i32
    %c0_i32_1 = arith.constant 0 : i32
    return %c0_i32, %c0_i32_0 : i32, i32
  }
  func.func @transform_5(%arg0: i32) -> (i32, i32) {
    %c0_i32 = arith.constant 0 : i32
    %c0_i32_0 = arith.constant 0 : i32
    %c0_i32_1 = arith.constant 0 : i32
    return %c0_i32, %c0_i32_0 : i32, i32
  }
  func.func @transform_6(%arg0: i32) -> (i32, i32) {
    %c0_i32 = arith.constant 0 : i32
    %c0_i32_0 = arith.constant 0 : i32
    %c0_i32_1 = arith.constant 0 : i32
    return %c0_i32, %c0_i32_0 : i32, i32
  }
  func.func @transform_7(%arg0: i32) -> (i32, i32) {
    %c0_i32 = arith.constant 0 : i32
    %c0_i32_0 = arith.constant 0 : i32
    return %arg0, %c0_i32 : i32, i32
  }
}

module attributes {stable_mosaic.version = 11 : i64} {
  func.func @_actor_discrete_kernel(%arg0: i32, %arg1: memref<32x16xbf16, #tpu.memory_space<vmem>>, %arg2: memref<16x128xbf16, #tpu.memory_space<vmem>>, %arg3: memref<1x128xf32, #tpu.memory_space<vmem>>, %arg4: memref<128x128xbf16, #tpu.memory_space<vmem>>, %arg5: memref<1x128xf32, #tpu.memory_space<vmem>>, %arg6: memref<128x128xbf16, #tpu.memory_space<vmem>>, %arg7: memref<1x128xf32, #tpu.memory_space<vmem>>, %arg8: memref<32x128xf32, #tpu.memory_space<vmem>>) attributes {dimension_semantics = [#tpu.dimension_semantics<parallel>], iteration_bounds = array<i64: 1>, scalar_prefetch = 0 : i64, scratch_operands = 0 : i64, tpu.core_type = #tpu.core_type<tc>, window_params = [{transform_indices = @transform_0, window_bounds = array<i64: 32, 16>}, {pipeline_mode = #tpu.pipeline_mode<synchronous>, transform_indices = @transform_1, window_bounds = array<i64: 16, 128>}, {pipeline_mode = #tpu.pipeline_mode<synchronous>, transform_indices = @transform_2, window_bounds = array<i64: 1, 128>}, {pipeline_mode = #tpu.pipeline_mode<synchronous>, transform_indices = @transform_3, window_bounds = array<i64: 128, 128>}, {pipeline_mode = #tpu.pipeline_mode<synchronous>, transform_indices = @transform_4, window_bounds = array<i64: 1, 128>}, {pipeline_mode = #tpu.pipeline_mode<synchronous>, transform_indices = @transform_5, window_bounds = array<i64: 128, 128>}, {pipeline_mode = #tpu.pipeline_mode<synchronous>, transform_indices = @transform_6, window_bounds = array<i64: 1, 128>}, {transform_indices = @transform_7, window_bounds = array<i64: 32, 128>}]} {
    %c0 = arith.constant 0 : index
    %c0_0 = arith.constant 0 : index
    %0 = vector.load %arg1[%c0, %c0_0] : memref<32x16xbf16, #tpu.memory_space<vmem>>, vector<32x16xbf16>
    %c0_1 = arith.constant 0 : index
    %c0_2 = arith.constant 0 : index
    %1 = vector.load %arg2[%c0_1, %c0_2] : memref<16x128xbf16, #tpu.memory_space<vmem>>, vector<16x128xbf16>
    %cst = arith.constant dense<0.000000e+00> : vector<32x128xf32>
    %2 = tpu.matmul %0, %1, %cst {dimension_numbers = #tpu.dot_dimension_numbers<[1], [0], [0], [1], [0, 0, 1, 1], [], []>} : vector<32x16xbf16>, vector<16x128xbf16>, vector<32x128xf32> -> vector<32x128xf32>
    %c0_3 = arith.constant 0 : index
    %c0_4 = arith.constant 0 : index
    %3 = vector.load %arg3[%c0_3, %c0_4] : memref<1x128xf32, #tpu.memory_space<vmem>>, vector<1x128xf32>
    %4 = vector.broadcast %3 : vector<1x128xf32> to vector<32x128xf32>
    %5 = arith.addf %2, %4 : vector<32x128xf32>
    %6 = math.tanh %5 : vector<32x128xf32>
    %7 = arith.truncf %6 : vector<32x128xf32> to vector<32x128xbf16>
    %c0_5 = arith.constant 0 : index
    %c0_6 = arith.constant 0 : index
    %8 = vector.load %arg4[%c0_5, %c0_6] : memref<128x128xbf16, #tpu.memory_space<vmem>>, vector<128x128xbf16>
    %cst_7 = arith.constant dense<0.000000e+00> : vector<32x128xf32>
    %9 = tpu.matmul %7, %8, %cst_7 {dimension_numbers = #tpu.dot_dimension_numbers<[1], [0], [0], [1], [0, 0, 1, 1], [], []>} : vector<32x128xbf16>, vector<128x128xbf16>, vector<32x128xf32> -> vector<32x128xf32>
    %c0_8 = arith.constant 0 : index
    %c0_9 = arith.constant 0 : index
    %10 = vector.load %arg5[%c0_8, %c0_9] : memref<1x128xf32, #tpu.memory_space<vmem>>, vector<1x128xf32>
    %11 = vector.broadcast %10 : vector<1x128xf32> to vector<32x128xf32>
    %12 = arith.addf %9, %11 : vector<32x128xf32>
    %13 = math.tanh %12 : vector<32x128xf32>
    %14 = arith.truncf %13 : vector<32x128xf32> to vector<32x128xbf16>
    %c0_10 = arith.constant 0 : index
    %c0_11 = arith.constant 0 : index
    %15 = vector.load %arg6[%c0_10, %c0_11] : memref<128x128xbf16, #tpu.memory_space<vmem>>, vector<128x128xbf16>
    %cst_12 = arith.constant dense<0.000000e+00> : vector<32x128xf32>
    %16 = tpu.matmul %14, %15, %cst_12 {dimension_numbers = #tpu.dot_dimension_numbers<[1], [0], [0], [1], [0, 0, 1, 1], [], []>} : vector<32x128xbf16>, vector<128x128xbf16>, vector<32x128xf32> -> vector<32x128xf32>
    %c0_13 = arith.constant 0 : index
    %c0_14 = arith.constant 0 : index
    %17 = vector.load %arg7[%c0_13, %c0_14] : memref<1x128xf32, #tpu.memory_space<vmem>>, vector<1x128xf32>
    %18 = vector.broadcast %17 : vector<1x128xf32> to vector<32x128xf32>
    %19 = arith.addf %16, %18 : vector<32x128xf32>
    %cst_15 = arith.constant dense<0xFF800000> : vector<32xf32>
    %20 = vector.multi_reduction <maximumf>, %19, %cst_15 [1] : vector<32x128xf32> to vector<32xf32>
    %21 = vector.shape_cast %20 : vector<32xf32> to vector<32x1xf32>
    %22 = vector.broadcast %21 : vector<32x1xf32> to vector<32x128xf32>
    %23 = arith.subf %19, %22 : vector<32x128xf32>
    %24 = math.exp %23 : vector<32x128xf32>
    %cst_16 = arith.constant dense<0.000000e+00> : vector<32xf32>
    %25 = vector.multi_reduction <add>, %24, %cst_16 [1] : vector<32x128xf32> to vector<32xf32>
    %26 = vector.shape_cast %25 : vector<32xf32> to vector<32x1xf32>
    %27 = tpu.reciprocal %26 {approx = true} : vector<32x1xf32> -> vector<32x1xf32>
    %28 = arith.mulf %26, %27 : vector<32x1xf32>
    %cst_17 = arith.constant 2.000000e+00 : f32
    %29 = vector.broadcast %cst_17 : f32 to vector<32x1xf32>
    %30 = arith.subf %29, %28 : vector<32x1xf32>
    %31 = arith.mulf %27, %30 : vector<32x1xf32>
    %32 = vector.broadcast %31 : vector<32x1xf32> to vector<32x128xf32>
    %33 = arith.mulf %24, %32 : vector<32x128xf32>
    %c0_18 = arith.constant 0 : index
    %c0_19 = arith.constant 0 : index
    %34 = vector.load %arg8[%c0_18, %c0_19] : memref<32x128xf32, #tpu.memory_space<vmem>>, vector<32x128xf32>
    tpu.vector_store %arg8[%c0_18, %c0_19], %33 {strides = array<i32>} : memref<32x128xf32, #tpu.memory_space<vmem>>, vector<32x128xf32>,
    return
  }
  func.func @transform_0(%arg0: i32) -> (i32, i32) {
    %c0_i32 = arith.constant 0 : i32
    %c0_i32_0 = arith.constant 0 : i32
    return %arg0, %c0_i32 : i32, i32
  }
  func.func @transform_1(%arg0: i32) -> (i32, i32) {
    %c0_i32 = arith.constant 0 : i32
    %c0_i32_0 = arith.constant 0 : i32
    %c0_i32_1 = arith.constant 0 : i32
    return %c0_i32, %c0_i32_0 : i32, i32
  }
  func.func @transform_2(%arg0: i32) -> (i32, i32) {
    %c0_i32 = arith.constant 0 : i32
    %c0_i32_0 = arith.constant 0 : i32
    %c0_i32_1 = arith.constant 0 : i32
    return %c0_i32, %c0_i32_0 : i32, i32
  }
  func.func @transform_3(%arg0: i32) -> (i32, i32) {
    %c0_i32 = arith.constant 0 : i32
    %c0_i32_0 = arith.constant 0 : i32
    %c0_i32_1 = arith.constant 0 : i32
    return %c0_i32, %c0_i32_0 : i32, i32
  }
  func.func @transform_4(%arg0: i32) -> (i32, i32) {
    %c0_i32 = arith.constant 0 : i32
    %c0_i32_0 = arith.constant 0 : i32
    %c0_i32_1 = arith.constant 0 : i32
    return %c0_i32, %c0_i32_0 : i32, i32
  }
  func.func @transform_5(%arg0: i32) -> (i32, i32) {
    %c0_i32 = arith.constant 0 : i32
    %c0_i32_0 = arith.constant 0 : i32
    %c0_i32_1 = arith.constant 0 : i32
    return %c0_i32, %c0_i32_0 : i32, i32
  }
  func.func @transform_6(%arg0: i32) -> (i32, i32) {
    %c0_i32 = arith.constant 0 : i32
    %c0_i32_0 = arith.constant 0 : i32
    %c0_i32_1 = arith.constant 0 : i32
    return %c0_i32, %c0_i32_0 : i32, i32
  }
  func.func @transform_7(%arg0: i32) -> (i32, i32) {
    %c0_i32 = arith.constant 0 : i32
    %c0_i32_0 = arith.constant 0 : i32
    return %arg0, %c0_i32 : i32, i32
  }
}

</mosaic_0001>

<bundles_post_ra>
// kernel: tpu_custom_call.1
= control target key start
LH: loop header
LB: loop body
LE: loop exit
PB: predicated region body
PF: predicated region fallthrough
CT: control target
= control target key end

     0   :  { %12 = vsyncpa [#allocation3], 0  ;;  %s787_s0 = inlined_call_operand.vmem [shape: bf16[32,16], index: 0, kind: input, shape index: {}]   ;;  %s788_s1 = inlined_call_operand.vmem [shape: bf16[16,128], index: 1, kind: input, shape index: {}]   ;;  %s789_s2 = inlined_call_operand.vmem [shape: f32[1,128], index: 2, kind: input, shape index: {}]   ;;  %s790_s3 = inlined_call_operand.hbm [shape: bf16[128,128], index: 3, kind: input, shape index: {}]   ;;  %s791_s4 = inlined_call_operand.vmem [shape: f32[1,128], index: 4, kind: input, shape index: {}]   ;;  %s792_s5 = inlined_call_operand.hbm [shape: bf16[128,128], index: 5, kind: input, shape index: {}]   ;;  %s793_s6 = inlined_call_operand.vmem [shape: f32[1,128], index: 6, kind: input, shape index: {}]   ;;  %s794_s7 = inlined_call_operand.hbm [shape: f32[32,128], index: 7, kind: output, shape index: {}]  }
   0x1   :  { %13 = vsyncpa [#allocation6], 0 }
   0x2   :  { %14 = vsyncpa [#allocation4], 0  ;;  %s686_s24 = smov [#allocation2]   ;;  %s614_s28 = scalar_lea.hbm %s790_s3, 1024 }
   0x3   :  { %s26_s25 = sshll.u32 %s686_s24, 4  ;;  %p615_p0 = scmp.ne.s32.totalorder %s790_s3, %s614_s28  ;;  %s27_s25 = int_to_ptr.vmem [resolvable:$true] %s26_s25 }
   0x4   :  { %p618_p1 = scmp.lt.u32.totalorder %s614_s28, %s790_s3 }
   0x6   :  { %p620_p2 = pnand %p618_p1, %p615_p0 }
   0x8   :  { %623 = shalt.err (!%p620_p2)
}
   0x9   :  { %s624_s10 = scalar_lea.vmem %s27_s25, 1024  ;;  %p629_p4 = scmp.lt.s32.totalorder %s27_s25, %s27_s25 }
   0xa   :  { %p625_p3 = scmp.ne.s32.totalorder %s27_s25, %s624_s10  ;;  %p630_p5 = scmp.lt.s32.totalorder %s624_s10, %s624_s10 }
   0xc   :  { %p631_p6 = por %p630_p5, %p629_p4 }
   0xe   :  { %p632_p7 = pnand %p631_p6, %p625_p3 }
  0x10   :  { %635 = shalt.err (!%p632_p7)
}
  0x11   :  { %s687_s11 = smov 64   ;;  %s688_s12 = smov 4  }
  0x12   :  { %32 = dma.hbm_to_vmem [thread:$0]  %s790_s3, 1024, %s27_s25, [#allocation3], %s687_s11, %s687_s11, %s688_s12  }
  0x13   :  { %s689_s15 = smov [#allocation5]   ;;  %s636_s19 = scalar_lea.hbm %s792_s5, 1024 }
  0x14   :  { %s40_s16 = sshll.u32 %s689_s15, 4  ;;  %p637_p8 = scmp.ne.s32.totalorder %s792_s5, %s636_s19  ;;  %s41_s16 = int_to_ptr.vmem [resolvable:$true] %s40_s16 }
  0x15   :  { %p640_p9 = scmp.lt.u32.totalorder %s636_s19, %s792_s5 }
  0x17   :  { %p642_p10 = pnand %p640_p9, %p637_p8 }
  0x19   :  { %645 = shalt.err (!%p642_p10)
}
  0x1a   :  { %s646_s24 = scalar_lea.vmem %s41_s16, 1024  ;;  %p651_p12 = scmp.lt.s32.totalorder %s41_s16, %s41_s16 }
  0x1b   :  { %p647_p11 = scmp.ne.s32.totalorder %s41_s16, %s646_s24  ;;  %p652_p13 = scmp.lt.s32.totalorder %s646_s24, %s646_s24 }
  0x1d   :  { %p653_p0 = por %p652_p13, %p651_p12 }
  0x1f   :  { %p654_p1 = pnand %p653_p0, %p647_p11 }
  0x21   :  { %657 = shalt.err (!%p654_p1)
}
  0x22   :  { %46 = dma.hbm_to_vmem [thread:$0]  %s792_s5, 1024, %s41_s16, [#allocation6], %s687_s11, %s687_s11, %s688_s12  }
  0x23   :  { %680 = dma.done.wait [#allocation3], 1024  }
  0x24   :  { %681 = vsyncadd [#allocation3], 4294966272 }
  0x25   :  { %682 = dma.done.wait [#allocation6], 1024  }
  0x26   :  { %683 = vsyncadd [#allocation6], 4294966272  ;;  %v563_v0 = vld [vmem:[%s788_s1] sm:$0xff]   ;;  %vm85_vm0 = vcmask 130048   ;;  %v565_v2 = vld [vmem:[%s787_s0 + $0x8] sm:$0xff]  }
  0x27   :  { %v564_v1 = vld [vmem:[%s787_s0] sm:$0xff]   ;;  %510 = vmatprep.subr.bf16.mxu0 %v563_v0  ;;  %v567_v4 = vld [vmem:[#allocation2 + $0x8] sm:$0xff]   ;;  %v568_v5 = vld [vmem:[#allocation2 + $0x10] sm:$0xff]  }
  0x28   :  { %511 = vmatpush3.bf16.msra.mxu0 %v563_v0  ;;  %512 = vmatprep.mubr.msk.bf16.mxu0 %vm85_vm0, %v564_v1  ;;  %v566_v3 = vld [vmem:[#allocation2] sm:$0xff]   ;;  %v569_v6 = vld [vmem:[#allocation2 + $0x18] sm:$0xff]   ;;  %v571_v8 = vld [vmem:[#allocation2 + $0x28] sm:$0xff]  }
  0x29   :  { %516 = vmatprep.subr.bf16.mxu1 %v566_v3  ;;  %v570_v7 = vld [vmem:[#allocation2 + $0x20] sm:$0xff]   ;;  %v572_v9 = vld [vmem:[#allocation2 + $0x30] sm:$0xff]   ;;  %v573_v10 = vld [vmem:[#allocation2 + $0x38] sm:$0xff]  }
  0x2a   :  { %517 = vmatpush3.bf16.msra.mxu1 %v566_v3  ;;  %v574_v11 = vld [vmem:[#allocation5] sm:$0xff]   ;;  %v575_v12 = vld [vmem:[#allocation5 + $0x8] sm:$0xff]   ;;  %v576_v13 = vld [vmem:[#allocation5 + $0x10] sm:$0xff]  }
  0x2b   :  { %513 = vmatmul.mubr.msk.bf16.vlgmr.msra.gmra.mrb[0].mxu0 %vm85_vm0, %v565_v2  ;;  %518 = vmatprep.subr.bf16.mxu1 %v567_v4  ;;  %v463_v14 = vld [vmem:[%s789_s2] ss:$0 sm:$0xff]  ;;  %v577_v29 = vld [vmem:[#allocation5 + $0x18] sm:$0xff]   ;;  %v579_v31 = vld [vmem:[#allocation5 + $0x28] sm:$0xff]  }
  0x2c   :  { %536 = vmatprep.subr.bf16.mxu0 %v574_v11  ;;  %v578_v30 = vld [vmem:[#allocation5 + $0x20] sm:$0xff]   ;;  %v580_v32 = vld [vmem:[#allocation5 + $0x30] sm:$0xff]   ;;  %v581_v33 = vld [vmem:[#allocation5 + $0x38] sm:$0xff]  }
  0x2d   :  { %537 = vmatpush3.bf16.msra.mxu0 %v574_v11  ;;  %v469_v34 = vld [vmem:[%s791_s4] ss:$0 sm:$0xff] }
  0x2e   :  { %519 = vmatpush3.bf16.msra.mxu1 %v567_v4  ;;  %538 = vmatprep.subr.bf16.mxu0 %v575_v12  ;;  %v478_v49 = vld [vmem:[%s793_s6] ss:$0 sm:$0xff]  ;;  %s690_s6 = smov [#allocation7]  }
  0x2f   :  { %520 = vmatprep.subr.bf16.mxu1 %v568_v5  ;;  %s450_s10 = sshll.u32 %s690_s6, 4  ;;  %s451_s10 = int_to_ptr.vmem [resolvable:$true] %s450_s10 }
  0x30   :  { %s658_s11 = scalar_lea.vmem %s451_s10, 512  ;;  %p663_p3 = scmp.lt.s32.totalorder %s451_s10, %s451_s10 }
  0x31   :  { %539 = vmatpush3.bf16.msra.mxu0 %v575_v12  ;;  %p659_p2 = scmp.ne.s32.totalorder %s451_s10, %s658_s11  ;;  %p664_p4 = scmp.lt.s32.totalorder %s658_s11, %s658_s11 }
  0x32   :  { %521 = vmatpush3.bf16.msra.mxu1 %v568_v5  ;;  %540 = vmatprep.subr.bf16.mxu0 %v576_v13 }
  0x33   :  { %522 = vmatprep.subr.bf16.mxu1 %v569_v6  ;;  %p665_p5 = por %p664_p4, %p663_p3 }
  0x35   :  { %541 = vmatpush3.bf16.msra.mxu0 %v576_v13  ;;  %p666_p6 = pnand %p665_p5, %p659_p2 }
  0x36   :  { %523 = vmatpush3.bf16.msra.mxu1 %v569_v6  ;;  %542 = vmatprep.subr.bf16.mxu0 %v577_v29 }
  0x37   :  { %524 = vmatprep.subr.bf16.mxu1 %v570_v7 }
  0x39   :  { %543 = vmatpush3.bf16.msra.mxu0 %v577_v29 }
  0x3a   :  { %525 = vmatpush3.bf16.msra.mxu1 %v570_v7  ;;  %544 = vmatprep.subr.bf16.mxu0 %v578_v30 }
  0x3b   :  { %526 = vmatprep.subr.bf16.mxu1 %v571_v8 }
  0x3d   :  { %545 = vmatpush3.bf16.msra.mxu0 %v578_v30 }
  0x3e   :  { %527 = vmatpush3.bf16.msra.mxu1 %v571_v8  ;;  %546 = vmatprep.subr.bf16.mxu0 %v579_v31 }
  0x3f   :  { %528 = vmatprep.subr.bf16.mxu1 %v572_v9 }
  0x41   :  { %547 = vmatpush3.bf16.msra.mxu0 %v579_v31 }
  0x42   :  { %529 = vmatpush3.bf16.msra.mxu1 %v572_v9  ;;  %548 = vmatprep.subr.bf16.mxu0 %v580_v32 }
  0x43   :  { %530 = vmatprep.subr.bf16.mxu1 %v573_v10 }
  0x45   :  { %549 = vmatpush3.bf16.msra.mxu0 %v580_v32 }
  0x46   :  { %531 = vmatpush3.bf16.msra.mxu1 %v573_v10  ;;  %550 = vmatprep.subr.bf16.mxu0 %v581_v33 }
  0x49   :  { %551 = vmatpush3.bf16.msra.mxu0 %v581_v33 }
  0xfe   :  { %v514_v15 = vpop.f32.mrb[0].mxu0 }
  0xff   :  { %v135_v16 = vadd.f32 %v514_v15, %v463_v14  ;;  %v126_v17 = vpop.f32.mrb[1].mxu0 }
 0x100   :  { %v127_v18 = vadd.f32 %v463_v14, %v126_v17  ;;  %v515_v19 = vpop.f32.mrb[2].mxu0 }
 0x101   :  { %582 = vtanh.f32 %v135_v16  ;;  %v138_v20 = vadd.f32 %v515_v19, %v463_v14  ;;  %v129_v21 = vpop.f32.mrb[3].mxu0 }
 0x102   :  { %584 = vtanh.f32 %v127_v18  ;;  %v130_v22 = vadd.f32 %v463_v14, %v129_v21 }
 0x103   :  { %586 = vtanh.f32 %v138_v20 }
 0x104   :  { %588 = vtanh.f32 %v130_v22 }
 0x10b   :  { %v583_v23 = vpop.eup %582 }
 0x10c   :  { %v585_v24 = vpop.eup %584 }
 0x10d   :  { %v587_v25 = vpop.eup %586 }
 0x10e   :  { %v589_v26 = vpop.eup %588  ;;  %v146_v27 = vpack.c.bf16 %v587_v25, %v583_v23 }
 0x10f   :  { %v145_v28 = vpack.c.bf16 %v589_v26, %v585_v24 }
 0x111   :  { %532 = vmatprep.mubr.bf16.mxu1 %v145_v28 }
 0x112   :  { %533 = vmatmul.mubr.bf16.vlgmr.msra.gmra.mrb[0].mxu1 %v146_v27 }
 0x1e5   :  { %v534_v35 = vpop.f32.mrb[0].mxu1 }
 0x1e6   :  { %v261_v36 = vadd.f32 %v534_v35, %v469_v34  ;;  %v252_v37 = vpop.f32.mrb[1].mxu1 }
 0x1e7   :  { %v253_v38 = vadd.f32 %v469_v34, %v252_v37  ;;  %v535_v39 = vpop.f32.mrb[2].mxu1 }
 0x1e8   :  { %590 = vtanh.f32 %v261_v36  ;;  %v264_v40 = vadd.f32 %v535_v39, %v469_v34  ;;  %v255_v41 = vpop.f32.mrb[3].mxu1 }
 0x1e9   :  { %592 = vtanh.f32 %v253_v38  ;;  %v256_v42 = vadd.f32 %v469_v34, %v255_v41 }
 0x1ea   :  { %594 = vtanh.f32 %v264_v40 }
 0x1eb   :  { %596 = vtanh.f32 %v256_v42 }
 0x1f2   :  { %v591_v43 = vpop.eup %590 }
 0x1f3   :  { %v593_v44 = vpop.eup %592 }
 0x1f4   :  { %v595_v45 = vpop.eup %594 }
 0x1f5   :  { %v597_v46 = vpop.eup %596  ;;  %v272_v47 = vpack.c.bf16 %v595_v45, %v591_v43 }
 0x1f6   :  { %v271_v48 = vpack.c.bf16 %v597_v46, %v593_v44 }
 0x1f8   :  { %552 = vmatprep.mubr.bf16.mxu0 %v271_v48 }
 0x1f9   :  { %553 = vmatmul.mubr.bf16.vlgmr.msra.gmra.mrb[4].mxu0 %v272_v47 }
 0x2cc   :  { %v554_v50 = vpop.f32.mrb[4].mxu0 }
 0x2cd   :  { %v387_v51 = vadd.f32 %v554_v50, %v478_v49  ;;  %v378_v52 = vpop.f32.mrb[5].mxu0 }
 0x2ce   :  { %v379_v53 = vadd.f32 %v478_v49, %v378_v52  ;;  %v555_v54 = vpop.f32.mrb[6].mxu0 }
 0x2cf   :  { %397 = vmax.xlane.f32.xlu1 %v387_v51  ;;  %v381_v55 = vpop.f32.mrb[7].mxu0  ;;  %v390_v56 = vadd.f32 %v555_v54, %v478_v49 }
 0x2d0   :  { %393 = vmax.xlane.f32.xlu0 %v379_v53  ;;  %v382_v57 = vadd.f32 %v478_v49, %v381_v55 }
 0x2d3   :  { %399 = vmax.xlane.f32.xlu1 %v390_v56 }
 0x2d4   :  { %395 = vmax.xlane.f32.xlu0 %v382_v57 }
 0x35c   :  { %v398_v58 = vpop.xlane.xlu1 %397 }
 0x35d   :  { %v403_v59 = vsub.f32 %v387_v51, %v398_v58  ;;  %v394_v60 = vpop.xlane.xlu0 %393 }
 0x35e   :  { %v401_v61 = vsub.f32 %v379_v53, %v394_v60 }
 0x35f   :  { %v409_v0 = vmul.f32 1.442695, %v403_v59 }
 0x360   :  { %v405_v62 = vmul.f32 1.442695, %v401_v61  ;;  %v400_v63 = vpop.xlane.xlu1 %399 }
 0x361   :  { %v396_v1 = vpop.xlane.xlu0 %395  ;;  %v404_v2 = vsub.f32 %v390_v56, %v400_v63 }
 0x362   :  { %598 = vpow2.f32 %v405_v62  ;;  %v402_v3 = vsub.f32 %v382_v57, %v396_v1 }
 0x363   :  { %600 = vpow2.f32 %v409_v0  ;;  %v411_v5 = vmul.f32 1.442695, %v404_v2 }
 0x364   :  { %v407_v4 = vmul.f32 1.442695, %v402_v3 }
 0x366   :  { %602 = vpow2.f32 %v407_v4 }
 0x367   :  { %604 = vpow2.f32 %v411_v5 }
 0x36c   :  { %v599_v6 = vpop.eup %598 }
 0x36d   :  { %413 = vadd.xlane.f32.xlu0 %v599_v6  ;;  %v601_v7 = vpop.eup %600 }
 0x370   :  { %v603_v8 = vpop.eup %602 }
 0x371   :  { %417 = vadd.xlane.f32.xlu0 %v601_v7  ;;  %415 = vadd.xlane.f32.xlu1 %v603_v8  ;;  %v605_v9 = vpop.eup %604 }
 0x375   :  { %419 = vadd.xlane.f32.xlu1 %v605_v9 }
 0x3fa   :  { %v414_v10 = vpop.xlane.xlu0 %413 }
 0x3fb   :  { %606 = vrcp.f32 %v414_v10 }
 0x3fe   :  { %v416_v11 = vpop.xlane.xlu1 %415  ;;  %v418_v12 = vpop.xlane.xlu0 %417 }
 0x3ff   :  { %608 = vrcp.f32 %v416_v11 }
 0x400   :  { %610 = vrcp.f32 %v418_v12 }
 0x402   :  { %v420_v13 = vpop.xlane.xlu1 %419 }
 0x403   :  { %612 = vrcp.f32 %v420_v13 }
 0x405   :  { %v607_v14 = vpop.eup %606 }
 0x406   :  { %v425_v15 = vmul.f32 %v607_v14, %v414_v10 }
 0x408   :  { %v429_v16 = vsub.f32 2.0, %v425_v15 }
 0x409   :  { %v609_v17 = vpop.eup %608 }
 0x40a   :  { %v611_v18 = vpop.eup %610  ;;  %v433_v19 = vmul.f32 %v607_v14, %v429_v16  ;;  %v426_v20 = vmul.f32 %v609_v17, %v416_v11 }
 0x40b   :  { %v427_v21 = vmul.f32 %v611_v18, %v418_v12 }
 0x40c   :  { %v437_v22 = vmul.f32 %v599_v6, %v433_v19  ;;  %v430_v23 = vsub.f32 2.0, %v426_v20 }
 0x40d   :  { %v613_v24 = vpop.eup %612  ;;  %v431_v25 = vsub.f32 2.0, %v427_v21 }
 0x40e   :  { %441 = vst [vmem:[#allocation7] sm:$0xff] %v437_v22  ;;  %v434_v26 = vmul.f32 %v609_v17, %v430_v23  ;;  %v428_v27 = vmul.f32 %v613_v24, %v420_v13 }
 0x40f   :  { %v435_v28 = vmul.f32 %v611_v18, %v431_v25 }
 0x410   :  { %v438_v29 = vmul.f32 %v603_v8, %v434_v26  ;;  %v432_v30 = vsub.f32 2.0, %v428_v27 }
 0x411   :  { %v439_v31 = vmul.f32 %v601_v7, %v435_v28 }
 0x412   :  { %442 = vst [vmem:[#allocation7 + $0x8] sm:$0xff] %v438_v29  ;;  %v436_v32 = vmul.f32 %v613_v24, %v432_v30 }
 0x413   :  { %443 = vst [vmem:[#allocation7 + $0x10] sm:$0xff] %v439_v31 }
 0x414   :  { %v440_v33 = vmul.f32 %v605_v9, %v436_v32 }
 0x416   :  { %444 = vst [vmem:[#allocation7 + $0x18] sm:$0xff] %v440_v33 }
 0x417   :  { %669 = shalt.err (!%p666_p6)
}
 0x418   :  { %s670_s14 = scalar_lea.hbm %s794_s7, 512 }
 0x419   :  { %p671_p7 = scmp.ne.s32.totalorder %s794_s7, %s670_s14  ;;  %p674_p8 = scmp.lt.u32.totalorder %s670_s14, %s794_s7 }
 0x41b   :  { %p676_p9 = pnand %p674_p8, %p671_p7 }
 0x41d   :  { %679 = shalt.err (!%p676_p9)
}
 0x41e   :  { %s691_s19 = smov 128   ;;  %s692_s20 = smov 8  }
 0x41f   :  { %456 = dma.vmem_to_hbm [thread:$0]  %s451_s10, 512, %s794_s7, [#allocation4], %s691_s19, %s691_s19, %s692_s20  }
 0x420   :  { %684 = dma.done.wait [#allocation4], 512  }
 0x421   :  { %685 = vsyncadd [#allocation4], 4294966784 }
 0x422   :  { %460 = vsyncpa [#allocation3], 1 }
 0x423   :  { %461 = vsyncpa [#allocation6], 1 }
 0x424   :  { %462 = vsyncpa [#allocation4], 1 }

// kernel: tpu_custom_call.1
= control target key start
LH: loop header
LB: loop body
LE: loop exit
PB: predicated region body
PF: predicated region fallthrough
CT: control target
= control target key end

     0   :  { %12 = vsyncpa [#allocation3], 0  ;;  %s787_s0 = inlined_call_operand.vmem [shape: bf16[32,16], index: 0, kind: input, shape index: {}]   ;;  %s788_s1 = inlined_call_operand.vmem [shape: bf16[16,128], index: 1, kind: input, shape index: {}]   ;;  %s789_s2 = inlined_call_operand.vmem [shape: f32[1,128], index: 2, kind: input, shape index: {}]   ;;  %s790_s3 = inlined_call_operand.hbm [shape: bf16[128,128], index: 3, kind: input, shape index: {}]   ;;  %s791_s4 = inlined_call_operand.vmem [shape: f32[1,128], index: 4, kind: input, shape index: {}]   ;;  %s792_s5 = inlined_call_operand.hbm [shape: bf16[128,128], index: 5, kind: input, shape index: {}]   ;;  %s793_s6 = inlined_call_operand.vmem [shape: f32[1,128], index: 6, kind: input, shape index: {}]   ;;  %s794_s7 = inlined_call_operand.hbm [shape: f32[32,128], index: 7, kind: output, shape index: {}]  }
   0x1   :  { %13 = vsyncpa [#allocation6], 0 }
   0x2   :  { %14 = vsyncpa [#allocation4], 0  ;;  %s686_s24 = smov [#allocation2]   ;;  %s614_s28 = scalar_lea.hbm %s790_s3, 1024 }
   0x3   :  { %s26_s25 = sshll.u32 %s686_s24, 4  ;;  %p615_p0 = scmp.ne.s32.totalorder %s790_s3, %s614_s28  ;;  %s27_s25 = int_to_ptr.vmem [resolvable:$true] %s26_s25 }
   0x4   :  { %p618_p1 = scmp.lt.u32.totalorder %s614_s28, %s790_s3 }
   0x6   :  { %p620_p2 = pnand %p618_p1, %p615_p0 }
   0x8   :  { %623 = shalt.err (!%p620_p2)
}
   0x9   :  { %s624_s10 = scalar_lea.vmem %s27_s25, 1024  ;;  %p629_p4 = scmp.lt.s32.totalorder %s27_s25, %s27_s25 }
   0xa   :  { %p625_p3 = scmp.ne.s32.totalorder %s27_s25, %s624_s10  ;;  %p630_p5 = scmp.lt.s32.totalorder %s624_s10, %s624_s10 }
   0xc   :  { %p631_p6 = por %p630_p5, %p629_p4 }
   0xe   :  { %p632_p7 = pnand %p631_p6, %p625_p3 }
  0x10   :  { %635 = shalt.err (!%p632_p7)
}
  0x11   :  { %s687_s11 = smov 64   ;;  %s688_s12 = smov 4  }
  0x12   :  { %32 = dma.hbm_to_vmem [thread:$0]  %s790_s3, 1024, %s27_s25, [#allocation3], %s687_s11, %s687_s11, %s688_s12  }
  0x13   :  { %s689_s15 = smov [#allocation5]   ;;  %s636_s19 = scalar_lea.hbm %s792_s5, 1024 }
  0x14   :  { %s40_s16 = sshll.u32 %s689_s15, 4  ;;  %p637_p8 = scmp.ne.s32.totalorder %s792_s5, %s636_s19  ;;  %s41_s16 = int_to_ptr.vmem [resolvable:$true] %s40_s16 }
  0x15   :  { %p640_p9 = scmp.lt.u32.totalorder %s636_s19, %s792_s5 }
  0x17   :  { %p642_p10 = pnand %p640_p9, %p637_p8 }
  0x19   :  { %645 = shalt.err (!%p642_p10)
}
  0x1a   :  { %s646_s24 = scalar_lea.vmem %s41_s16, 1024  ;;  %p651_p12 = scmp.lt.s32.totalorder %s41_s16, %s41_s16 }
  0x1b   :  { %p647_p11 = scmp.ne.s32.totalorder %s41_s16, %s646_s24  ;;  %p652_p13 = scmp.lt.s32.totalorder %s646_s24, %s646_s24 }
  0x1d   :  { %p653_p0 = por %p652_p13, %p651_p12 }
  0x1f   :  { %p654_p1 = pnand %p653_p0, %p647_p11 }
  0x21   :  { %657 = shalt.err (!%p654_p1)
}
  0x22   :  { %46 = dma.hbm_to_vmem [thread:$0]  %s792_s5, 1024, %s41_s16, [#allocation6], %s687_s11, %s687_s11, %s688_s12  }
  0x23   :  { %680 = dma.done.wait [#allocation3], 1024  }
  0x24   :  { %681 = vsyncadd [#allocation3], 4294966272 }
  0x25   :  { %682 = dma.done.wait [#allocation6], 1024  }
  0x26   :  { %683 = vsyncadd [#allocation6], 4294966272  ;;  %v563_v0 = vld [vmem:[%s788_s1] sm:$0xff]   ;;  %vm85_vm0 = vcmask 130048   ;;  %v565_v2 = vld [vmem:[%s787_s0 + $0x8] sm:$0xff]  }
  0x27   :  { %v564_v1 = vld [vmem:[%s787_s0] sm:$0xff]   ;;  %510 = vmatprep.subr.bf16.mxu0 %v563_v0  ;;  %v567_v4 = vld [vmem:[#allocation2 + $0x8] sm:$0xff]   ;;  %v568_v5 = vld [vmem:[#allocation2 + $0x10] sm:$0xff]  }
  0x28   :  { %511 = vmatpush3.bf16.msra.mxu0 %v563_v0  ;;  %512 = vmatprep.mubr.msk.bf16.mxu0 %vm85_vm0, %v564_v1  ;;  %v566_v3 = vld [vmem:[#allocation2] sm:$0xff]   ;;  %v569_v6 = vld [vmem:[#allocation2 + $0x18] sm:$0xff]   ;;  %v571_v8 = vld [vmem:[#allocation2 + $0x28] sm:$0xff]  }
  0x29   :  { %516 = vmatprep.subr.bf16.mxu1 %v566_v3  ;;  %v570_v7 = vld [vmem:[#allocation2 + $0x20] sm:$0xff]   ;;  %v572_v9 = vld [vmem:[#allocation2 + $0x30] sm:$0xff]   ;;  %v573_v10 = vld [vmem:[#allocation2 + $0x38] sm:$0xff]  }
  0x2a   :  { %517 = vmatpush3.bf16.msra.mxu1 %v566_v3  ;;  %v574_v11 = vld [vmem:[#allocation5] sm:$0xff]   ;;  %v575_v12 = vld [vmem:[#allocation5 + $0x8] sm:$0xff]   ;;  %v576_v13 = vld [vmem:[#allocation5 + $0x10] sm:$0xff]  }
  0x2b   :  { %513 = vmatmul.mubr.msk.bf16.vlgmr.msra.gmra.mrb[0].mxu0 %vm85_vm0, %v565_v2  ;;  %518 = vmatprep.subr.bf16.mxu1 %v567_v4  ;;  %v463_v14 = vld [vmem:[%s789_s2] ss:$0 sm:$0xff]  ;;  %v577_v29 = vld [vmem:[#allocation5 + $0x18] sm:$0xff]   ;;  %v579_v31 = vld [vmem:[#allocation5 + $0x28] sm:$0xff]  }
  0x2c   :  { %536 = vmatprep.subr.bf16.mxu0 %v574_v11  ;;  %v578_v30 = vld [vmem:[#allocation5 + $0x20] sm:$0xff]   ;;  %v580_v32 = vld [vmem:[#allocation5 + $0x30] sm:$0xff]   ;;  %v581_v33 = vld [vmem:[#allocation5 + $0x38] sm:$0xff]  }
  0x2d   :  { %537 = vmatpush3.bf16.msra.mxu0 %v574_v11  ;;  %v469_v34 = vld [vmem:[%s791_s4] ss:$0 sm:$0xff] }
  0x2e   :  { %519 = vmatpush3.bf16.msra.mxu1 %v567_v4  ;;  %538 = vmatprep.subr.bf16.mxu0 %v575_v12  ;;  %v478_v49 = vld [vmem:[%s793_s6] ss:$0 sm:$0xff]  ;;  %s690_s6 = smov [#allocation7]  }
  0x2f   :  { %520 = vmatprep.subr.bf16.mxu1 %v568_v5  ;;  %s450_s10 = sshll.u32 %s690_s6, 4  ;;  %s451_s10 = int_to_ptr.vmem [resolvable:$true] %s450_s10 }
  0x30   :  { %s658_s11 = scalar_lea.vmem %s451_s10, 512  ;;  %p663_p3 = scmp.lt.s32.totalorder %s451_s10, %s451_s10 }
  0x31   :  { %539 = vmatpush3.bf16.msra.mxu0 %v575_v12  ;;  %p659_p2 = scmp.ne.s32.totalorder %s451_s10, %s658_s11  ;;  %p664_p4 = scmp.lt.s32.totalorder %s658_s11, %s658_s11 }
  0x32   :  { %521 = vmatpush3.bf16.msra.mxu1 %v568_v5  ;;  %540 = vmatprep.subr.bf16.mxu0 %v576_v13 }
  0x33   :  { %522 = vmatprep.subr.bf16.mxu1 %v569_v6  ;;  %p665_p5 = por %p664_p4, %p663_p3 }
  0x35   :  { %541 = vmatpush3.bf16.msra.mxu0 %v576_v13  ;;  %p666_p6 = pnand %p665_p5, %p659_p2 }
  0x36   :  { %523 = vmatpush3.bf16.msra.mxu1 %v569_v6  ;;  %542 = vmatprep.subr.bf16.mxu0 %v577_v29 }
  0x37   :  { %524 = vmatprep.subr.bf16.mxu1 %v570_v7 }
  0x39   :  { %543 = vmatpush3.bf16.msra.mxu0 %v577_v29 }
  0x3a   :  { %525 = vmatpush3.bf16.msra.mxu1 %v570_v7  ;;  %544 = vmatprep.subr.bf16.mxu0 %v578_v30 }
  0x3b   :  { %526 = vmatprep.subr.bf16.mxu1 %v571_v8 }
  0x3d   :  { %545 = vmatpush3.bf16.msra.mxu0 %v578_v30 }
  0x3e   :  { %527 = vmatpush3.bf16.msra.mxu1 %v571_v8  ;;  %546 = vmatprep.subr.bf16.mxu0 %v579_v31 }
  0x3f   :  { %528 = vmatprep.subr.bf16.mxu1 %v572_v9 }
  0x41   :  { %547 = vmatpush3.bf16.msra.mxu0 %v579_v31 }
  0x42   :  { %529 = vmatpush3.bf16.msra.mxu1 %v572_v9  ;;  %548 = vmatprep.subr.bf16.mxu0 %v580_v32 }
  0x43   :  { %530 = vmatprep.subr.bf16.mxu1 %v573_v10 }
  0x45   :  { %549 = vmatpush3.bf16.msra.mxu0 %v580_v32 }
  0x46   :  { %531 = vmatpush3.bf16.msra.mxu1 %v573_v10  ;;  %550 = vmatprep.subr.bf16.mxu0 %v581_v33 }
  0x49   :  { %551 = vmatpush3.bf16.msra.mxu0 %v581_v33 }
  0xfe   :  { %v514_v15 = vpop.f32.mrb[0].mxu0 }
  0xff   :  { %v135_v16 = vadd.f32 %v514_v15, %v463_v14  ;;  %v126_v17 = vpop.f32.mrb[1].mxu0 }
 0x100   :  { %v127_v18 = vadd.f32 %v463_v14, %v126_v17  ;;  %v515_v19 = vpop.f32.mrb[2].mxu0 }
 0x101   :  { %582 = vtanh.f32 %v135_v16  ;;  %v138_v20 = vadd.f32 %v515_v19, %v463_v14  ;;  %v129_v21 = vpop.f32.mrb[3].mxu0 }
 0x102   :  { %584 = vtanh.f32 %v127_v18  ;;  %v130_v22 = vadd.f32 %v463_v14, %v129_v21 }
 0x103   :  { %586 = vtanh.f32 %v138_v20 }
 0x104   :  { %588 = vtanh.f32 %v130_v22 }
 0x10b   :  { %v583_v23 = vpop.eup %582 }
 0x10c   :  { %v585_v24 = vpop.eup %584 }
 0x10d   :  { %v587_v25 = vpop.eup %586 }
 0x10e   :  { %v589_v26 = vpop.eup %588  ;;  %v146_v27 = vpack.c.bf16 %v587_v25, %v583_v23 }
 0x10f   :  { %v145_v28 = vpack.c.bf16 %v589_v26, %v585_v24 }
 0x111   :  { %532 = vmatprep.mubr.bf16.mxu1 %v145_v28 }
 0x112   :  { %533 = vmatmul.mubr.bf16.vlgmr.msra.gmra.mrb[0].mxu1 %v146_v27 }
 0x1e5   :  { %v534_v35 = vpop.f32.mrb[0].mxu1 }
 0x1e6   :  { %v261_v36 = vadd.f32 %v534_v35, %v469_v34  ;;  %v252_v37 = vpop.f32.mrb[1].mxu1 }
 0x1e7   :  { %v253_v38 = vadd.f32 %v469_v34, %v252_v37  ;;  %v535_v39 = vpop.f32.mrb[2].mxu1 }
 0x1e8   :  { %590 = vtanh.f32 %v261_v36  ;;  %v264_v40 = vadd.f32 %v535_v39, %v469_v34  ;;  %v255_v41 = vpop.f32.mrb[3].mxu1 }
 0x1e9   :  { %592 = vtanh.f32 %v253_v38  ;;  %v256_v42 = vadd.f32 %v469_v34, %v255_v41 }
 0x1ea   :  { %594 = vtanh.f32 %v264_v40 }
 0x1eb   :  { %596 = vtanh.f32 %v256_v42 }
 0x1f2   :  { %v591_v43 = vpop.eup %590 }
 0x1f3   :  { %v593_v44 = vpop.eup %592 }
 0x1f4   :  { %v595_v45 = vpop.eup %594 }
 0x1f5   :  { %v597_v46 = vpop.eup %596  ;;  %v272_v47 = vpack.c.bf16 %v595_v45, %v591_v43 }
 0x1f6   :  { %v271_v48 = vpack.c.bf16 %v597_v46, %v593_v44 }
 0x1f8   :  { %552 = vmatprep.mubr.bf16.mxu0 %v271_v48 }
 0x1f9   :  { %553 = vmatmul.mubr.bf16.vlgmr.msra.gmra.mrb[4].mxu0 %v272_v47 }
 0x2cc   :  { %v554_v50 = vpop.f32.mrb[4].mxu0 }
 0x2cd   :  { %v387_v51 = vadd.f32 %v554_v50, %v478_v49  ;;  %v378_v52 = vpop.f32.mrb[5].mxu0 }
 0x2ce   :  { %v379_v53 = vadd.f32 %v478_v49, %v378_v52  ;;  %v555_v54 = vpop.f32.mrb[6].mxu0 }
 0x2cf   :  { %397 = vmax.xlane.f32.xlu1 %v387_v51  ;;  %v381_v55 = vpop.f32.mrb[7].mxu0  ;;  %v390_v56 = vadd.f32 %v555_v54, %v478_v49 }
 0x2d0   :  { %393 = vmax.xlane.f32.xlu0 %v379_v53  ;;  %v382_v57 = vadd.f32 %v478_v49, %v381_v55 }
 0x2d3   :  { %399 = vmax.xlane.f32.xlu1 %v390_v56 }
 0x2d4   :  { %395 = vmax.xlane.f32.xlu0 %v382_v57 }
 0x35c   :  { %v398_v58 = vpop.xlane.xlu1 %397 }
 0x35d   :  { %v403_v59 = vsub.f32 %v387_v51, %v398_v58  ;;  %v394_v60 = vpop.xlane.xlu0 %393 }
 0x35e   :  { %v401_v61 = vsub.f32 %v379_v53, %v394_v60 }
 0x35f   :  { %v409_v0 = vmul.f32 1.442695, %v403_v59 }
 0x360   :  { %v405_v62 = vmul.f32 1.442695, %v401_v61  ;;  %v400_v63 = vpop.xlane.xlu1 %399 }
 0x361   :  { %v396_v1 = vpop.xlane.xlu0 %395  ;;  %v404_v2 = vsub.f32 %v390_v56, %v400_v63 }
 0x362   :  { %598 = vpow2.f32 %v405_v62  ;;  %v402_v3 = vsub.f32 %v382_v57, %v396_v1 }
 0x363   :  { %600 = vpow2.f32 %v409_v0  ;;  %v411_v5 = vmul.f32 1.442695, %v404_v2 }
 0x364   :  { %v407_v4 = vmul.f32 1.442695, %v402_v3 }
 0x366   :  { %602 = vpow2.f32 %v407_v4 }
 0x367   :  { %604 = vpow2.f32 %v411_v5 }
 0x36c   :  { %v599_v6 = vpop.eup %598 }
 0x36d   :  { %413 = vadd.xlane.f32.xlu0 %v599_v6  ;;  %v601_v7 = vpop.eup %600 }
 0x370   :  { %v603_v8 = vpop.eup %602 }
 0x371   :  { %417 = vadd.xlane.f32.xlu0 %v601_v7  ;;  %415 = vadd.xlane.f32.xlu1 %v603_v8  ;;  %v605_v9 = vpop.eup %604 }
 0x375   :  { %419 = vadd.xlane.f32.xlu1 %v605_v9 }
 0x3fa   :  { %v414_v10 = vpop.xlane.xlu0 %413 }
 0x3fb   :  { %606 = vrcp.f32 %v414_v10 }
 0x3fe   :  { %v416_v11 = vpop.xlane.xlu1 %415  ;;  %v418_v12 = vpop.xlane.xlu0 %417 }
 0x3ff   :  { %608 = vrcp.f32 %v416_v11 }
 0x400   :  { %610 = vrcp.f32 %v418_v12 }
 0x402   :  { %v420_v13 = vpop.xlane.xlu1 %419 }
 0x403   :  { %612 = vrcp.f32 %v420_v13 }
 0x405   :  { %v607_v14 = vpop.eup %606 }
 0x406   :  { %v425_v15 = vmul.f32 %v607_v14, %v414_v10 }
 0x408   :  { %v429_v16 = vsub.f32 2.0, %v425_v15 }
 0x409   :  { %v609_v17 = vpop.eup %608 }
 0x40a   :  { %v611_v18 = vpop.eup %610  ;;  %v433_v19 = vmul.f32 %v607_v14, %v429_v16  ;;  %v426_v20 = vmul.f32 %v609_v17, %v416_v11 }
 0x40b   :  { %v427_v21 = vmul.f32 %v611_v18, %v418_v12 }
 0x40c   :  { %v437_v22 = vmul.f32 %v599_v6, %v433_v19  ;;  %v430_v23 = vsub.f32 2.0, %v426_v20 }
 0x40d   :  { %v613_v24 = vpop.eup %612  ;;  %v431_v25 = vsub.f32 2.0, %v427_v21 }
 0x40e   :  { %441 = vst [vmem:[#allocation7] sm:$0xff] %v437_v22  ;;  %v434_v26 = vmul.f32 %v609_v17, %v430_v23  ;;  %v428_v27 = vmul.f32 %v613_v24, %v420_v13 }
 0x40f   :  { %v435_v28 = vmul.f32 %v611_v18, %v431_v25 }
 0x410   :  { %v438_v29 = vmul.f32 %v603_v8, %v434_v26  ;;  %v432_v30 = vsub.f32 2.0, %v428_v27 }
 0x411   :  { %v439_v31 = vmul.f32 %v601_v7, %v435_v28 }
 0x412   :  { %442 = vst [vmem:[#allocation7 + $0x8] sm:$0xff] %v438_v29  ;;  %v436_v32 = vmul.f32 %v613_v24, %v432_v30 }
 0x413   :  { %443 = vst [vmem:[#allocation7 + $0x10] sm:$0xff] %v439_v31 }
 0x414   :  { %v440_v33 = vmul.f32 %v605_v9, %v436_v32 }
 0x416   :  { %444 = vst [vmem:[#allocation7 + $0x18] sm:$0xff] %v440_v33 }
 0x417   :  { %669 = shalt.err (!%p666_p6)
}
 0x418   :  { %s670_s14 = scalar_lea.hbm %s794_s7, 512 }
 0x419   :  { %p671_p7 = scmp.ne.s32.totalorder %s794_s7, %s670_s14  ;;  %p674_p8 = scmp.lt.u32.totalorder %s670_s14, %s794_s7 }
 0x41b   :  { %p676_p9 = pnand %p674_p8, %p671_p7 }
 0x41d   :  { %679 = shalt.err (!%p676_p9)
}
 0x41e   :  { %s691_s19 = smov 128   ;;  %s692_s20 = smov 8  }
 0x41f   :  { %456 = dma.vmem_to_hbm [thread:$0]  %s451_s10, 512, %s794_s7, [#allocation4], %s691_s19, %s691_s19, %s692_s20  }
 0x420   :  { %684 = dma.done.wait [#allocation4], 512  }
 0x421   :  { %685 = vsyncadd [#allocation4], 4294966784 }
 0x422   :  { %460 = vsyncpa [#allocation3], 1 }
 0x423   :  { %461 = vsyncpa [#allocation6], 1 }
 0x424   :  { %462 = vsyncpa [#allocation4], 1 }

</bundles_post_ra>
